<compile_context>
chip_gen: v7x
topology: tpu7x:2x2x1
jax: 0.10.0
libtpu: 0.0.40
codegen_flags: <defaults>
</compile_context>

<pallas_src>
import functools

import jax
import jax.numpy as jnp
from jax.experimental import pallas as pl
from jax.experimental.pallas import tpu as pltpu


def _round_up(x, m):
    return (x + m - 1) // m * m


def _clamp_vmem_limit(need_bytes):
    # generous headroom, floor at 32 MiB (raises v5e's 16 MiB scoped default),
    # cap at 64 MiB (valid on every generation incl. v7x physical VMEM).
    return int(min(max(int(need_bytes * 1.5) + (4 << 20), 32 << 20), 64 << 20))


# ----------------------------------------------------------------------------
# Fused path: all layers in one pallas_call, weights resident in VMEM.
# ----------------------------------------------------------------------------
def _fused_mlp_kernel(*refs, n_layer, dims_p):
    """refs = (x, w0, b0, ..., w_{L-1}, b_{L-1}, out, h_scratch)."""
    x_ref = refs[0]
    o_ref = refs[1 + 2 * n_layer]
    h_ref = refs[2 + 2 * n_layer]          # f32 VMEM scratch for activations

    h = x_ref[...]                          # compute dtype (bf16 or f32)
    for layer in range(n_layer):
        w = refs[1 + 2 * layer][...]        # (in_p, out_p) compute dtype, zero-padded
        b = refs[2 + 2 * layer][...]        # (1, out_p)  f32, zero-padded
        if layer > 0:
            h = h_ref[:, : dims_p[layer]].astype(w.dtype)
        y = jnp.dot(h, w, preferred_element_type=jnp.float32)   # MXU, f32 acc
        act = jnp.maximum(y + b, 0.0)                            # VPU, f32
        if layer < n_layer - 1:
            h_ref[:, : dims_p[layer + 1]] = act                  # stays on-chip
        else:
            o_ref[...] = act.astype(o_ref.dtype)


def _pick_tb(batch, row_bytes):
    """Batch-tile rows: sublane aligned, grows with batch, keeps >=2 grid steps."""
    if batch <= 128:
        return _round_up(max(batch, 1), 8)
    tb = 128
    for cand in (256, 512):
        # >= 2 tiles so the "parallel" axis can shard across v7x's two TCs,
        # and keep the per-tile footprint modest.
        if batch >= 2 * cand and cand * row_bytes <= 8 * (1 << 20):
            tb = cand
    return tb


def _fused_forward(x, flat, n_layer, dims, dims_p, compute_dtype):
    batch = x.shape[0]
    cd_bytes = jnp.dtype(compute_dtype).itemsize
    scratch_w = max(dims_p[1:n_layer]) if n_layer >= 2 else 128
    row_bytes = dims_p[0] * cd_bytes + dims_p[-1] * 4 + scratch_w * 4
    tb = _pick_tb(batch, row_bytes)
    batch_p = _round_up(batch, tb)

    # Only the activation is padded per call; params were pre-padded once.
    x_p = jnp.zeros((batch_p, dims_p[0]), compute_dtype)
    x_p = x_p.at[:batch, : dims[0]].set(x.astype(compute_dtype))

    in_specs = [pl.BlockSpec((tb, dims_p[0]), lambda i: (i, 0))]
    # Whole-array, single-copy resident weights/biases in VMEM (no per-step
    # DMA, no 2x double buffer for grid-invariant blocks).
    for _ in range(2 * n_layer):
        in_specs.append(pl.BlockSpec(memory_space=pltpu.MemorySpace.VMEM))
    out_specs = pl.BlockSpec((tb, dims_p[-1]), lambda i: (i, 0))

    wb_bytes = sum(a.size * a.dtype.itemsize for a in flat)
    need = (wb_bytes
            + tb * (dims_p[0] * cd_bytes + dims_p[-1] * 4) * 2   # x/out double buffers
            + tb * scratch_w * 4)                                # activation scratch
    vmem_limit = _clamp_vmem_limit(need)

    out_p = pl.pallas_call(
        functools.partial(_fused_mlp_kernel, n_layer=n_layer, dims_p=dims_p),
        out_shape=jax.ShapeDtypeStruct((batch_p, dims_p[-1]), jnp.float32),
        grid=(batch_p // tb,),
        in_specs=in_specs,
        out_specs=out_specs,
        scratch_shapes=[pltpu.VMEM((tb, scratch_w), jnp.float32)],
        compiler_params=pltpu.CompilerParams(
            dimension_semantics=("parallel",),
            vmem_limit_bytes=vmem_limit),
    )(x_p, *flat)

    return out_p[:batch, : dims[-1]]


# ----------------------------------------------------------------------------
# Tiled path: per-layer (M, N, K) grid with a VMEM f32 accumulator.
# ----------------------------------------------------------------------------
def _linear_relu_kernel(x_ref, w_ref, b_ref, o_ref, acc_ref):
    k = pl.program_id(2)

    @pl.when(k == 0)
    def _():
        acc_ref[...] = jnp.zeros_like(acc_ref)

    acc_ref[...] += jnp.dot(x_ref[...], w_ref[...],
                            preferred_element_type=jnp.float32)

    @pl.when(k == pl.num_programs(2) - 1)
    def _():
        o_ref[...] = jnp.maximum(acc_ref[...] + b_ref[...], 0.0).astype(o_ref.dtype)


def _linear_relu_tiled(x_p, w_p, b_p, out_dtype, *, tm, tn, tk):
    M, K = x_p.shape
    N = w_p.shape[1]
    cd = x_p.dtype.itemsize
    ob = jnp.dtype(out_dtype).itemsize
    need = (tm * tk * cd + tk * tn * cd + tn * 4 + tm * tn * ob) * 2 + tm * tn * 4
    vmem_limit = _clamp_vmem_limit(need)
    return pl.pallas_call(
        _linear_relu_kernel,
        out_shape=jax.ShapeDtypeStruct((M, N), out_dtype),
        grid=(M // tm, N // tn, K // tk),
        in_specs=[pl.BlockSpec((tm, tk), lambda i, j, k: (i, k)),
                  pl.BlockSpec((tk, tn), lambda i, j, k: (k, j)),
                  pl.BlockSpec((1, tn), lambda i, j, k: (0, j))],
        out_specs=pl.BlockSpec((tm, tn), lambda i, j, k: (i, j)),
        scratch_shapes=[pltpu.VMEM((tm, tn), jnp.float32)],
        compiler_params=pltpu.CompilerParams(
            dimension_semantics=("parallel", "parallel", "arbitrary"),
            vmem_limit_bytes=vmem_limit),
    )(x_p, w_p, b_p)


def _tiled_forward(x, flat, n_layer, dims, dims_p, compute_dtype):
    batch = x.shape[0]
    # 256-wide K/N tiles feed the 2x256x256 MXU on v6e/v7x (dims_p already
    # 256-aligned); 128-wide would half-fill each systolic pass.
    tm = 256 if batch >= 256 else _round_up(max(batch, 1), 8)
    batch_p = _round_up(batch, tm)
    h = jnp.zeros((batch_p, dims_p[0]), compute_dtype)
    h = h.at[:batch, : dims[0]].set(x.astype(compute_dtype))
    for layer in range(n_layer):
        w_p, b_p = flat[2 * layer], flat[2 * layer + 1]
        last = layer == n_layer - 1
        out_dtype = jnp.float32 if last else compute_dtype
        h = _linear_relu_tiled(
            h, w_p, b_p, out_dtype,
            tm=tm, tn=min(256, dims_p[layer + 1]), tk=min(256, dims_p[layer]))
    return h[:batch, : dims[-1]]


# ----------------------------------------------------------------------------
# Wrapper: pads parameters ONCE (hoisted out of the hot path), picks a path.
# ----------------------------------------------------------------------------
def _pad_params(params, input_dim, *, compute_dtype, align):
    dims = [int(input_dim)] + [int(w.shape[1]) for w, _ in params]
    dims_p = [_round_up(d, align) for d in dims]
    padded = []
    for layer, (w, b) in enumerate(params):
        in_p, out_p = dims_p[layer], dims_p[layer + 1]
        w_p = jnp.zeros((in_p, out_p), compute_dtype)
        w_p = w_p.at[: w.shape[0], : w.shape[1]].set(w.astype(compute_dtype))
        b_p = jnp.zeros((1, out_p), jnp.float32)
        b_p = b_p.at[:, : w.shape[1]].set(jnp.asarray(b, jnp.float32).reshape(1, -1))
        padded += [w_p, b_p]
    return tuple(dims), tuple(dims_p), tuple(padded)


def _mlp_forward_impl(x, *flat, n_layer, dims, dims_p, mode, compute_dtype):
    if mode == "fused":
        return _fused_forward(x, flat, n_layer, dims, dims_p, compute_dtype)
    return _tiled_forward(x, flat, n_layer, dims, dims_p, compute_dtype)


class PallasMLP:
    """ReLU(x @ W_l + b_l) for l = 0..n_layer-1 (mirrors the PyTorch MLP)."""

    def __init__(self, params, input_dim, *, compute_dtype=jnp.bfloat16, mode="auto"):
        n_layer = len(params)
        cd_bytes = jnp.dtype(compute_dtype).itemsize
        dims_raw = [int(input_dim)] + [int(w.shape[1]) for w, _ in params]
        if mode == "auto":
            dims128 = [_round_up(d, 128) for d in dims_raw]
            resident = sum(dims128[l] * dims128[l + 1] * cd_bytes
                           for l in range(n_layer))
            # All-layers-resident weights only when they comfortably fit VMEM
            # on every generation (v7x: 64 MiB physical); otherwise tile.
            mode = "fused" if (resident <= 24 << 20 and max(dims128) <= 4096) else "tiled"
        self.mode = mode
        self.compute_dtype = compute_dtype
        align = 256 if mode == "tiled" else 128
        self.dims, self.dims_p, self._flat_params = _pad_params(
            params, input_dim, compute_dtype=compute_dtype, align=align)
        self.n_layer = n_layer
        self._fwd = jax.jit(functools.partial(
            _mlp_forward_impl, n_layer=n_layer, dims=self.dims,
            dims_p=self.dims_p, mode=mode, compute_dtype=compute_dtype))

    def __call__(self, x):
        return self._fwd(x, *self._flat_params)


# ----------------------------------------------------------------------------
# Init / reference (mirror the PyTorch module: first in->hid, mid hid->hid, last hid->out).
# ----------------------------------------------------------------------------
def init_mlp_params(key, n_layer, input_dim, hidden_dim, output_dim):
    dims = [input_dim] + [hidden_dim] * (n_layer - 1) + [output_dim]
    params = []
    for layer in range(n_layer):
        key, wk, bk = jax.random.split(key, 3)
        fan_in, fan_out = dims[layer], dims[layer + 1]
        bound = 1.0 / jnp.sqrt(fan_in)
        w = jax.random.uniform(wk, (fan_in, fan_out), jnp.float32, -bound, bound)
        b = jax.random.uniform(bk, (1, fan_out), jnp.float32, -bound, bound)
        params.append((w, b))
    return params


def reference_forward(x, params):
    for w, b in params:
        x = jnp.maximum(x @ w + b, 0.0)
    return x


if __name__ == "__main__":
    n_layer, input_dim, hidden_dim, output_dim, batch = 3, 16, 32, 8, 8

    key = jax.random.PRNGKey(0)
    key, xk = jax.random.split(key)
    x = jax.random.normal(xk, (batch, input_dim), jnp.float32)
    params = init_mlp_params(key, n_layer, input_dim, hidden_dim, output_dim)
    ref = reference_forward(x, params)

    # 1) fused path, f32 operands (numerically faithful to the PyTorch module).
    mlp_f32 = PallasMLP(params, input_dim, compute_dtype=jnp.float32)
    assert mlp_f32.mode == "fused"
    out = jax.block_until_ready(mlp_f32(x))
    assert out.shape == (batch, output_dim), out.shape
    assert jnp.allclose(out, ref, atol=1e-5, rtol=1e-5), "f32 fused mismatch"

    # 2) fused path, bf16 operands / f32 MXU accumulation (v6e/v7x native).
    mlp_bf16 = PallasMLP(params, input_dim, compute_dtype=jnp.bfloat16)
    out_bf16 = jax.block_until_ready(mlp_bf16(x))
    assert jnp.allclose(out_bf16, ref, atol=3e-2, rtol=3e-2), "bf16 fused mismatch"

    # 3) K/N-tiled per-layer path (the production-size path), forced here at
    #    moderate dims so it stays a quick self-check.
    key, xk2 = jax.random.split(key)
    batch2, d2 = 256, 512
    x2 = jax.random.normal(xk2, (batch2, d2), jnp.float32)
    params2 = init_mlp_params(key, 2, d2, d2, d2)
    ref2 = reference_forward(x2, params2)
    mlp_tiled = PallasMLP(params2, d2, compute_dtype=jnp.bfloat16, mode="tiled")
    out2 = jax.block_until_ready(mlp_tiled(x2))
    assert out2.shape == (batch2, d2), out2.shape
    assert jnp.allclose(out2, ref2, atol=5e-2, rtol=5e-2), "tiled mismatch"

    print("KERNEL_OK")
</pallas_src>

<mosaic_0001>
module attributes {stable_mosaic.version = 11 : i64} {
  func.func @_fused_mlp_kernel(%arg0: i32, %arg1: memref<8x128xf32, #tpu.memory_space<vmem>>, %arg2: memref<128x128xf32, #tpu.memory_space<vmem>>, %arg3: memref<1x128xf32, #tpu.memory_space<vmem>>, %arg4: memref<128x128xf32, #tpu.memory_space<vmem>>, %arg5: memref<1x128xf32, #tpu.memory_space<vmem>>, %arg6: memref<128x128xf32, #tpu.memory_space<vmem>>, %arg7: memref<1x128xf32, #tpu.memory_space<vmem>>, %arg8: memref<8x128xf32, #tpu.memory_space<vmem>>, %arg9: memref<8x128xf32, #tpu.memory_space<vmem>>) attributes {dimension_semantics = [#tpu.dimension_semantics<parallel>], iteration_bounds = array<i64: 1>, scalar_prefetch = 0 : i64, scratch_operands = 1 : i64, tpu.core_type = #tpu.core_type<tc>, window_params = [{transform_indices = @transform_0, window_bounds = array<i64: 8, 128>}, {pipeline_mode = #tpu.pipeline_mode<synchronous>, transform_indices = @transform_1, window_bounds = array<i64: 128, 128>}, {pipeline_mode = #tpu.pipeline_mode<synchronous>, transform_indices = @transform_2, window_bounds = array<i64: 1, 128>}, {pipeline_mode = #tpu.pipeline_mode<synchronous>, transform_indices = @transform_3, window_bounds = array<i64: 128, 128>}, {pipeline_mode = #tpu.pipeline_mode<synchronous>, transform_indices = @transform_4, window_bounds = array<i64: 1, 128>}, {pipeline_mode = #tpu.pipeline_mode<synchronous>, transform_indices = @transform_5, window_bounds = array<i64: 128, 128>}, {pipeline_mode = #tpu.pipeline_mode<synchronous>, transform_indices = @transform_6, window_bounds = array<i64: 1, 128>}, {transform_indices = @transform_7, window_bounds = array<i64: 8, 128>}]} {
    %c0 = arith.constant 0 : index
    %c0_0 = arith.constant 0 : index
    %0 = vector.load %arg1[%c0, %c0_0] : memref<8x128xf32, #tpu.memory_space<vmem>>, vector<8x128xf32>
    %c0_1 = arith.constant 0 : index
    %c0_2 = arith.constant 0 : index
    %1 = vector.load %arg2[%c0_1, %c0_2] : memref<128x128xf32, #tpu.memory_space<vmem>>, vector<128x128xf32>
    %c0_3 = arith.constant 0 : index
    %c0_4 = arith.constant 0 : index
    %2 = vector.load %arg3[%c0_3, %c0_4] : memref<1x128xf32, #tpu.memory_space<vmem>>, vector<1x128xf32>
    %cst = arith.constant dense<0.000000e+00> : vector<8x128xf32>
    %3 = tpu.matmul %0, %1, %cst {dimension_numbers = #tpu.dot_dimension_numbers<[1], [0], [0], [1], [0, 0, 1, 1], [], []>} : vector<8x128xf32>, vector<128x128xf32>, vector<8x128xf32> -> vector<8x128xf32>
    %4 = vector.broadcast %2 : vector<1x128xf32> to vector<8x128xf32>
    %5 = arith.addf %3, %4 : vector<8x128xf32>
    %cst_5 = arith.constant 0.000000e+00 : f32
    %6 = vector.broadcast %cst_5 : f32 to vector<8x128xf32>
    %7 = arith.maximumf %5, %6 : vector<8x128xf32>
    %c0_6 = arith.constant 0 : index
    %c0_7 = arith.constant 0 : index
    %8 = vector.load %arg9[%c0_6, %c0_7] : memref<8x128xf32, #tpu.memory_space<vmem>>, vector<8x128xf32>
    tpu.vector_store %arg9[%c0_6, %c0_7], %7 {strides = array<i32>} : memref<8x128xf32, #tpu.memory_space<vmem>>, vector<8x128xf32>,
    %c0_8 = arith.constant 0 : index
    %c0_9 = arith.constant 0 : index
    %9 = vector.load %arg4[%c0_8, %c0_9] : memref<128x128xf32, #tpu.memory_space<vmem>>, vector<128x128xf32>
    %c0_10 = arith.constant 0 : index
    %c0_11 = arith.constant 0 : index
    %10 = vector.load %arg5[%c0_10, %c0_11] : memref<1x128xf32, #tpu.memory_space<vmem>>, vector<1x128xf32>
    %c0_12 = arith.constant 0 : index
    %c0_13 = arith.constant 0 : index
    %11 = vector.load %arg9[%c0_12, %c0_13] : memref<8x128xf32, #tpu.memory_space<vmem>>, vector<8x128xf32>
    %cst_14 = arith.constant dense<0.000000e+00> : vector<8x128xf32>
    %12 = tpu.matmul %11, %9, %cst_14 {dimension_numbers = #tpu.dot_dimension_numbers<[1], [0], [0], [1], [0, 0, 1, 1], [], []>} : vector<8x128xf32>, vector<128x128xf32>, vector<8x128xf32> -> vector<8x128xf32>
    %13 = vector.broadcast %10 : vector<1x128xf32> to vector<8x128xf32>
    %14 = arith.addf %12, %13 : vector<8x128xf32>
    %cst_15 = arith.constant 0.000000e+00 : f32
    %15 = vector.broadcast %cst_15 : f32 to vector<8x128xf32>
    %16 = arith.maximumf %14, %15 : vector<8x128xf32>
    %c0_16 = arith.constant 0 : index
    %c0_17 = arith.constant 0 : index
    %17 = vector.load %arg9[%c0_16, %c0_17] : memref<8x128xf32, #tpu.memory_space<vmem>>, vector<8x128xf32>
    tpu.vector_store %arg9[%c0_16, %c0_17], %16 {strides = array<i32>} : memref<8x128xf32, #tpu.memory_space<vmem>>, vector<8x128xf32>,
    %c0_18 = arith.constant 0 : index
    %c0_19 = arith.constant 0 : index
    %18 = vector.load %arg6[%c0_18, %c0_19] : memref<128x128xf32, #tpu.memory_space<vmem>>, vector<128x128xf32>
    %c0_20 = arith.constant 0 : index
    %c0_21 = arith.constant 0 : index
    %19 = vector.load %arg7[%c0_20, %c0_21] : memref<1x128xf32, #tpu.memory_space<vmem>>, vector<1x128xf32>
    %c0_22 = arith.constant 0 : index
    %c0_23 = arith.constant 0 : index
    %20 = vector.load %arg9[%c0_22, %c0_23] : memref<8x128xf32, #tpu.memory_space<vmem>>, vector<8x128xf32>
    %cst_24 = arith.constant dense<0.000000e+00> : vector<8x128xf32>
    %21 = tpu.matmul %20, %18, %cst_24 {dimension_numbers = #tpu.dot_dimension_numbers<[1], [0], [0], [1], [0, 0, 1, 1], [], []>} : vector<8x128xf32>, vector<128x128xf32>, vector<8x128xf32> -> vector<8x128xf32>
    %22 = vector.broadcast %19 : vector<1x128xf32> to vector<8x128xf32>
    %23 = arith.addf %21, %22 : vector<8x128xf32>
    %cst_25 = arith.constant 0.000000e+00 : f32
    %24 = vector.broadcast %cst_25 : f32 to vector<8x128xf32>
    %25 = arith.maximumf %23, %24 : vector<8x128xf32>
    %c0_26 = arith.constant 0 : index
    %c0_27 = arith.constant 0 : index
    %26 = vector.load %arg8[%c0_26, %c0_27] : memref<8x128xf32, #tpu.memory_space<vmem>>, vector<8x128xf32>
    tpu.vector_store %arg8[%c0_26, %c0_27], %25 {strides = array<i32>} : memref<8x128xf32, #tpu.memory_space<vmem>>, vector<8x128xf32>,
    return
  }
  func.func @transform_0(%arg0: i32) -> (i32, i32) {
    %c0_i32 = arith.constant 0 : i32
    %c0_i32_0 = arith.constant 0 : i32
    return %arg0, %c0_i32 : i32, i32
  }
  func.func @transform_1(%arg0: i32) -> (i32, i32) {
    %c0_i32 = arith.constant 0 : i32
    %c0_i32_0 = arith.constant 0 : i32
    %c0_i32_1 = arith.constant 0 : i32
    return %c0_i32, %c0_i32_0 : i32, i32
  }
  func.func @transform_2(%arg0: i32) -> (i32, i32) {
    %c0_i32 = arith.constant 0 : i32
    %c0_i32_0 = arith.constant 0 : i32
    %c0_i32_1 = arith.constant 0 : i32
    return %c0_i32, %c0_i32_0 : i32, i32
  }
  func.func @transform_3(%arg0: i32) -> (i32, i32) {
    %c0_i32 = arith.constant 0 : i32
    %c0_i32_0 = arith.constant 0 : i32
    %c0_i32_1 = arith.constant 0 : i32
    return %c0_i32, %c0_i32_0 : i32, i32
  }
  func.func @transform_4(%arg0: i32) -> (i32, i32) {
    %c0_i32 = arith.constant 0 : i32
    %c0_i32_0 = arith.constant 0 : i32
    %c0_i32_1 = arith.constant 0 : i32
    return %c0_i32, %c0_i32_0 : i32, i32
  }
  func.func @transform_5(%arg0: i32) -> (i32, i32) {
    %c0_i32 = arith.constant 0 : i32
    %c0_i32_0 = arith.constant 0 : i32
    %c0_i32_1 = arith.constant 0 : i32
    return %c0_i32, %c0_i32_0 : i32, i32
  }
  func.func @transform_6(%arg0: i32) -> (i32, i32) {
    %c0_i32 = arith.constant 0 : i32
    %c0_i32_0 = arith.constant 0 : i32
    %c0_i32_1 = arith.constant 0 : i32
    return %c0_i32, %c0_i32_0 : i32, i32
  }
  func.func @transform_7(%arg0: i32) -> (i32, i32) {
    %c0_i32 = arith.constant 0 : i32
    %c0_i32_0 = arith.constant 0 : i32
    return %arg0, %c0_i32 : i32, i32
  }
}

</mosaic_0001>

<bundles_post_ra>
// kernel: _mlp_forward_impl.1
= control target key start
LH: loop header
LB: loop body
LE: loop exit
PB: predicated region body
PF: predicated region fallthrough
CT: control target
= control target key end

     0   :  { %12 = vsyncpa [#allocation4], 0  ;;  %s861_s0 = inlined_call_operand.vmem [shape: f32[8,128], index: 0, kind: input, shape index: {}]   ;;  %s862_s1 = inlined_call_operand.hbm [shape: f32[128,128], index: 1, kind: input, shape index: {}]   ;;  %s863_s2 = inlined_call_operand.vmem [shape: f32[1,128], index: 2, kind: input, shape index: {}]   ;;  %s864_s3 = inlined_call_operand.hbm [shape: f32[128,128], index: 3, kind: input, shape index: {}]   ;;  %s865_s4 = inlined_call_operand.vmem [shape: f32[1,128], index: 4, kind: input, shape index: {}]   ;;  %s866_s5 = inlined_call_operand.hbm [shape: f32[128,128], index: 5, kind: input, shape index: {}]   ;;  %s867_s6 = inlined_call_operand.vmem [shape: f32[1,128], index: 6, kind: input, shape index: {}]   ;;  %s868_s7 = inlined_call_operand.hbm [shape: f32[8,128], index: 7, kind: output, shape index: {}]  }
   0x1   :  { %13 = vsyncpa [#allocation7], 0 }
   0x2   :  { %14 = vsyncpa [#allocation5], 0  ;;  %s706_s24 = smov [#allocation6]   ;;  %s707_s26 = smov [#allocation3]  }
   0x3   :  { %s36_s25 = sshll.u32 %s706_s24, 4  ;;  %s22_s27 = sshll.u32 %s707_s26, 4  ;;  %s37_s25 = int_to_ptr.vmem [resolvable:$true] %s36_s25  ;;  %s755_s27 = int_to_ptr.vmem [resolvable:$true] %s22_s27 }
   0x4   :  { %s612_s30 = scalar_lea.hbm %s864_s3, 2048 }
   0x5   :  { %p613_p0 = scmp.ne.s32.totalorder %s864_s3, %s612_s30  ;;  %p616_p1 = scmp.lt.u32.totalorder %s612_s30, %s864_s3 }
   0x7   :  { %p618_p2 = pnand %p616_p1, %p613_p0 }
   0x9   :  { %621 = shalt.err (!%p618_p2)
}
   0xa   :  { %s622_s12 = scalar_lea.vmem %s37_s25, 2048  ;;  %p627_p4 = scmp.lt.s32.totalorder %s37_s25, %s37_s25 }
   0xb   :  { %p623_p3 = scmp.ne.s32.totalorder %s37_s25, %s622_s12  ;;  %p628_p5 = scmp.lt.s32.totalorder %s622_s12, %s622_s12 }
   0xd   :  { %p629_p6 = por %p628_p5, %p627_p4 }
   0xf   :  { %p630_p7 = pnand %p629_p6, %p623_p3 }
  0x11   :  { %633 = shalt.err (!%p630_p7)
}
  0x12   :  { %s708_s13 = smov 128   ;;  %s709_s14 = smov 8  }
  0x13   :  { %42 = dma.hbm_to_vmem [thread:$0]  %s864_s3, 2048, %s37_s25, [#allocation7], %s708_s13, %s708_s13, %s709_s14  }
  0x14   :  { %s634_s19 = scalar_lea.hbm %s862_s1, 2048 }
  0x15   :  { %p635_p8 = scmp.ne.s32.totalorder %s862_s1, %s634_s19  ;;  %p638_p9 = scmp.lt.u32.totalorder %s634_s19, %s862_s1 }
  0x17   :  { %p640_p10 = pnand %p638_p9, %p635_p8 }
  0x19   :  { %643 = shalt.err (!%p640_p10)
}
  0x1a   :  { %s644_s24 = scalar_lea.vmem %s755_s27, 2048  ;;  %p649_p12 = scmp.lt.s32.totalorder %s755_s27, %s755_s27 }
  0x1b   :  { %p645_p11 = scmp.ne.s32.totalorder %s755_s27, %s644_s24  ;;  %p650_p13 = scmp.lt.s32.totalorder %s644_s24, %s644_s24 }
  0x1d   :  { %p651_p0 = por %p650_p13, %p649_p12 }
  0x1f   :  { %p652_p1 = pnand %p651_p0, %p645_p11 }
  0x21   :  { %655 = shalt.err (!%p652_p1)
}
  0x22   :  { %28 = dma.hbm_to_vmem [thread:$0]  %s862_s1, 2048, %s755_s27, [#allocation4], %s708_s13, %s708_s13, %s709_s14  }
  0x23   :  { %s710_s26 = smov [#allocation8]   ;;  %s656_s8 = scalar_lea.hbm %s866_s5, 2048 }
  0x24   :  { %s50_s28 = sshll.u32 %s710_s26, 4  ;;  %p657_p2 = scmp.ne.s32.totalorder %s866_s5, %s656_s8  ;;  %s51_s28 = int_to_ptr.vmem [resolvable:$true] %s50_s28 }
  0x25   :  { %p660_p3 = scmp.lt.u32.totalorder %s656_s8, %s866_s5 }
  0x27   :  { %p662_p4 = pnand %p660_p3, %p657_p2 }
  0x29   :  { %665 = shalt.err (!%p662_p4)
}
  0x2a   :  { %s666_s15 = scalar_lea.vmem %s51_s28, 2048  ;;  %p671_p6 = scmp.lt.s32.totalorder %s51_s28, %s51_s28 }
  0x2b   :  { %p667_p5 = scmp.ne.s32.totalorder %s51_s28, %s666_s15  ;;  %p672_p7 = scmp.lt.s32.totalorder %s666_s15, %s666_s15 }
  0x2d   :  { %p673_p8 = por %p672_p7, %p671_p6 }
  0x2f   :  { %p674_p9 = pnand %p673_p8, %p667_p5 }
  0x31   :  { %677 = shalt.err (!%p674_p9)
}
  0x32   :  { %56 = dma.hbm_to_vmem [thread:$0]  %s866_s5, 2048, %s51_s28, [#allocation7], %s708_s13, %s708_s13, %s709_s14  }
  0x33   :  { %700 = dma.done.wait [#allocation4], 2048  }
  0x34   :  { %701 = vsyncadd [#allocation4], 4294965248 }
  0x35   :  { %702 = dma.done.wait [#allocation7], 4096  }
  0x36   :  { %703 = vsyncadd [#allocation7], 4294963200  ;;  %v711_v0 = vmov 0.0|0.0   ;;  %vm712_vm0 = vmmov 0   ;;  %v713_v1 = vmov 0.0   ;;  %v69_v2 = vld [vmem:[#allocation3] sm:$0xff] }
  0x37   :  { %531 = vmatprep.subr.bf16.mxu0 %v711_v0  ;;  %458 = vmatprep.mubr.msk.f32.mxu0 %vm712_vm0, %v713_v1  ;;  %v70_v3 = vld [vmem:[#allocation3 + $0x8] sm:$0xff]  ;;  %v71_v4 = vld [vmem:[#allocation3 + $0x10] sm:$0xff]  ;;  %v72_v6 = vld [vmem:[#allocation3 + $0x18] sm:$0xff]  ;;  %s714_s19 = smov [#allocation9]  }
  0x38   :  { %555 = vmatprep.subr.bf16.mxu1 %v711_v0  ;;  %493 = vmatprep.mubr.msk.f32.mxu1 %vm712_vm0, %v713_v1  ;;  %v532_v5 = vpack.c.bf16 %v70_v3, %v69_v2  ;;  %v535_v7 = vpack.c.bf16 %v72_v6, %v71_v4  ;;  %v73_v8 = vld [vmem:[#allocation3 + $0x20] sm:$0xff]  ;;  %v74_v9 = vld [vmem:[#allocation3 + $0x28] sm:$0xff]  ;;  %v166_v12 = vld [vmem:[#allocation6 + $0x10] sm:$0xff]  ;;  %s362_s20 = sshll.u32 %s714_s19, 4  ;;  %s363_s20 = int_to_ptr.vmem [resolvable:$true] %s362_s20 }
  0x39   :  { %v164_v10 = vld [vmem:[#allocation6] sm:$0xff]  ;;  %v165_v11 = vld [vmem:[#allocation6 + $0x8] sm:$0xff]  ;;  %v167_v13 = vld [vmem:[#allocation6 + $0x18] sm:$0xff]  ;;  %v538_v14 = vpack.c.bf16 %v74_v9, %v73_v8  ;;  %s678_s21 = scalar_lea.vmem %s363_s20, 128  ;;  %p683_p11 = scmp.lt.s32.totalorder %s363_s20, %s363_s20 }
  0x3a   :  { %533 = vmatpush3.bf16.msra.mxu0 %v532_v5  ;;  %v556_v15 = vpack.c.bf16 %v165_v11, %v164_v10  ;;  %v75_v16 = vld [vmem:[#allocation3 + $0x30] sm:$0xff]  ;;  %v76_v17 = vld [vmem:[#allocation3 + $0x38] sm:$0xff]  ;;  %v559_v18 = vpack.c.bf16 %v167_v13, %v166_v12  ;;  %v168_v19 = vld [vmem:[#allocation6 + $0x20] sm:$0xff]  ;;  %p679_p10 = scmp.ne.s32.totalorder %s363_s20, %s678_s21  ;;  %p684_p12 = scmp.lt.s32.totalorder %s678_s21, %s678_s21 }
  0x3b   :  { %534 = vmatprep.subr.bf16.mxu0 %v711_v0  ;;  %v169_v20 = vld [vmem:[#allocation6 + $0x28] sm:$0xff]  ;;  %v541_v21 = vpack.c.bf16 %v76_v17, %v75_v16  ;;  %v77_v22 = vld [vmem:[#allocation3 + $0x40] sm:$0xff]  ;;  %v170_v25 = vld [vmem:[#allocation6 + $0x30] sm:$0xff] }
  0x3c   :  { %557 = vmatpush3.bf16.msra.mxu1 %v556_v15  ;;  %v78_v23 = vld [vmem:[#allocation3 + $0x48] sm:$0xff]  ;;  %v562_v24 = vpack.c.bf16 %v169_v20, %v168_v19  ;;  %v171_v26 = vld [vmem:[#allocation6 + $0x38] sm:$0xff]  ;;  %v79_v28 = vld [vmem:[#allocation3 + $0x50] sm:$0xff]  ;;  %p685_p13 = por %p684_p12, %p683_p11 }
  0x3d   :  { %558 = vmatprep.subr.bf16.mxu1 %v711_v0  ;;  %v544_v27 = vpack.c.bf16 %v78_v23, %v77_v22  ;;  %v80_v29 = vld [vmem:[#allocation3 + $0x58] sm:$0xff]  ;;  %v565_v30 = vpack.c.bf16 %v171_v26, %v170_v25  ;;  %v172_v31 = vld [vmem:[#allocation6 + $0x40] sm:$0xff]  ;;  %v173_v32 = vld [vmem:[#allocation6 + $0x48] sm:$0xff] }
  0x3e   :  { %536 = vmatpush3.bf16.msra.mxu0 %v535_v7  ;;  %v547_v33 = vpack.c.bf16 %v80_v29, %v79_v28  ;;  %v81_v34 = vld [vmem:[#allocation3 + $0x60] sm:$0xff]  ;;  %v82_v35 = vld [vmem:[#allocation3 + $0x68] sm:$0xff]  ;;  %v568_v36 = vpack.c.bf16 %v173_v32, %v172_v31  ;;  %v174_v37 = vld [vmem:[#allocation6 + $0x50] sm:$0xff]  ;;  %p686_p0 = pnand %p685_p13, %p679_p10 }
  0x3f   :  { %537 = vmatprep.subr.bf16.mxu0 %v711_v0  ;;  %v175_v38 = vld [vmem:[#allocation6 + $0x58] sm:$0xff]  ;;  %v550_v39 = vpack.c.bf16 %v82_v35, %v81_v34  ;;  %v83_v40 = vld [vmem:[#allocation3 + $0x70] sm:$0xff]  ;;  %v176_v43 = vld [vmem:[#allocation6 + $0x60] sm:$0xff] }
  0x40   :  { %560 = vmatpush3.bf16.msra.mxu1 %v559_v18  ;;  %v84_v41 = vld [vmem:[#allocation3 + $0x78] sm:$0xff]  ;;  %v571_v42 = vpack.c.bf16 %v175_v38, %v174_v37  ;;  %v177_v44 = vld [vmem:[#allocation6 + $0x68] sm:$0xff]  ;;  %v68_v47 = vld [vmem:[%s861_s0] sm:$0xff] }
  0x41   :  { %561 = vmatprep.subr.bf16.mxu1 %v711_v0  ;;  %v553_v45 = vpack.c.bf16 %v84_v41, %v83_v40  ;;  %v574_v46 = vpack.c.bf16 %v177_v44, %v176_v43  ;;  %v178_v48 = vld [vmem:[#allocation6 + $0x70] sm:$0xff]  ;;  %v179_v49 = vld [vmem:[#allocation6 + $0x78] sm:$0xff]  ;;  %v260_v51 = vld [vmem:[#allocation8] sm:$0xff] }
  0x42   :  { %539 = vmatpush3.bf16.msra.mxu0 %v538_v14  ;;  %v577_v50 = vpack.c.bf16 %v179_v49, %v178_v48  ;;  %v261_v52 = vld [vmem:[#allocation8 + $0x8] sm:$0xff]  ;;  %v262_v53 = vld [vmem:[#allocation8 + $0x10] sm:$0xff]  ;;  %v263_v55 = vld [vmem:[#allocation8 + $0x18] sm:$0xff] }
  0x43   :  { %540 = vmatprep.subr.bf16.mxu0 %v711_v0  ;;  %v580_v54 = vpack.c.bf16 %v261_v52, %v260_v51  ;;  %v583_v56 = vpack.c.bf16 %v263_v55, %v262_v53  ;;  %v264_v57 = vld [vmem:[#allocation8 + $0x20] sm:$0xff]  ;;  %v265_v58 = vld [vmem:[#allocation8 + $0x28] sm:$0xff]  ;;  %v266_v60 = vld [vmem:[#allocation8 + $0x30] sm:$0xff] }
  0x44   :  { %563 = vmatpush3.bf16.msra.mxu1 %v562_v24  ;;  %v586_v59 = vpack.c.bf16 %v265_v58, %v264_v57  ;;  %v267_v61 = vld [vmem:[#allocation8 + $0x38] sm:$0xff]  ;;  %v268_v63 = vld [vmem:[#allocation8 + $0x40] sm:$0xff]  ;;  %v270_v3 = vld [vmem:[#allocation8 + $0x50] sm:$0xff] }
  0x45   :  { %564 = vmatprep.subr.bf16.mxu1 %v711_v0  ;;  %v589_v62 = vpack.c.bf16 %v267_v61, %v266_v60  ;;  %v271_v4 = vld [vmem:[#allocation8 + $0x58] sm:$0xff]  ;;  %v272_v6 = vld [vmem:[#allocation8 + $0x60] sm:$0xff]  ;;  %v273_v7 = vld [vmem:[#allocation8 + $0x68] sm:$0xff] }
  0x46   :  { %542 = vmatpush3.bf16.msra.mxu0 %v541_v21  ;;  %v595_v5 = vpack.c.bf16 %v271_v4, %v270_v3  ;;  %v598_v8 = vpack.c.bf16 %v273_v7, %v272_v6  ;;  %v372_v9 = vld [vmem:[%s863_s2] ss:$0 sm:$0xff]  ;;  %v274_v14 = vld [vmem:[#allocation8 + $0x70] sm:$0xff]  ;;  %v275_v15 = vld [vmem:[#allocation8 + $0x78] sm:$0xff] }
  0x47   :  { %543 = vmatprep.subr.bf16.mxu0 %v711_v0  ;;  %v601_v16 = vpack.c.bf16 %v275_v15, %v274_v14  ;;  %v373_v17 = vld [vmem:[%s865_s4] ss:$0 sm:$0xff] }
  0x48   :  { %566 = vmatpush3.bf16.msra.mxu1 %v565_v30  ;;  %v374_v21 = vld [vmem:[%s867_s6] ss:$0 sm:$0xff] }
  0x49   :  { %567 = vmatprep.subr.bf16.mxu1 %v711_v0 }
  0x4a   :  { %545 = vmatpush3.bf16.msra.mxu0 %v544_v27 }
  0x4b   :  { %546 = vmatprep.subr.bf16.mxu0 %v711_v0 }
  0x4c   :  { %569 = vmatpush3.bf16.msra.mxu1 %v568_v36 }
  0x4d   :  { %570 = vmatprep.subr.bf16.mxu1 %v711_v0 }
  0x4e   :  { %548 = vmatpush3.bf16.msra.mxu0 %v547_v33 }
  0x4f   :  { %549 = vmatprep.subr.bf16.mxu0 %v711_v0 }
  0x50   :  { %572 = vmatpush3.bf16.msra.mxu1 %v571_v42 }
  0x51   :  { %573 = vmatprep.subr.bf16.mxu1 %v711_v0 }
  0x52   :  { %551 = vmatpush3.bf16.msra.mxu0 %v550_v39 }
  0x53   :  { %552 = vmatprep.subr.bf16.mxu0 %v711_v0 }
  0x54   :  { %575 = vmatpush3.bf16.msra.mxu1 %v574_v46 }
  0x55   :  { %576 = vmatprep.subr.bf16.mxu1 %v711_v0 }
  0x56   :  { %554 = vmatpush3.bf16.msra.mxu0 %v553_v45 }
  0x57   :  { %579 = vmatprep.subr.bf16.mxu0 %v711_v0 }
  0x58   :  { %578 = vmatpush3.bf16.msra.mxu1 %v577_v50 }
  0x59   :  { %459 = vmatmul.mubr.f32.vlgmr.msra.gmra.mrb[0].mxu0 %v68_v47 }
  0x5a   :  { %528 = vmatprep.mubr.msk.f32.mxu0 %vm712_vm0, %v713_v1  ;;  %581 = vmatpush3.bf16.msra.mxu0 %v580_v54  ;;  %v269_v1 = vld [vmem:[#allocation8 + $0x48] sm:$0xff] }
  0x5b   :  { %582 = vmatprep.subr.bf16.mxu0 %v711_v0  ;;  %v592_v2 = vpack.c.bf16 %v269_v1, %v268_v63 }
  0x5e   :  { %584 = vmatpush3.bf16.msra.mxu0 %v583_v56 }
  0x5f   :  { %585 = vmatprep.subr.bf16.mxu0 %v711_v0 }
  0x62   :  { %587 = vmatpush3.bf16.msra.mxu0 %v586_v59 }
  0x63   :  { %588 = vmatprep.subr.bf16.mxu0 %v711_v0 }
  0x66   :  { %590 = vmatpush3.bf16.msra.mxu0 %v589_v62 }
  0x67   :  { %591 = vmatprep.subr.bf16.mxu0 %v711_v0 }
  0x6a   :  { %593 = vmatpush3.bf16.msra.mxu0 %v592_v2 }
  0x6b   :  { %594 = vmatprep.subr.bf16.mxu0 %v711_v0 }
  0x6e   :  { %596 = vmatpush3.bf16.msra.mxu0 %v595_v5 }
  0x6f   :  { %597 = vmatprep.subr.bf16.mxu0 %v711_v0 }
  0x72   :  { %599 = vmatpush3.bf16.msra.mxu0 %v598_v8 }
  0x73   :  { %600 = vmatprep.subr.bf16.mxu0 %v711_v0 }
  0x76   :  { %602 = vmatpush3.bf16.msra.mxu0 %v601_v16 }
 0x12c   :  { %v158_v10 = vpop.f32.mrb[0].mxu0 }
 0x12d   :  { %v159_v11 = vadd.f32 %v372_v9, %v158_v10  ;;  %v460_v12 = vpop.f32.mrb[1].mxu0 }
 0x12f   :  { %v162_v13 = vmax.f32 %v159_v11, 0.0 }
 0x131   :  { %494 = vmatmul.mubr.f32.vlgmr.msra.gmra.mrb[0].mxu1 %v162_v13 }
 0x204   :  { %v254_v18 = vpop.f32.mrb[0].mxu1 }
 0x205   :  { %v255_v19 = vadd.f32 %v373_v17, %v254_v18  ;;  %v495_v0 = vpop.f32.mrb[1].mxu1 }
 0x207   :  { %v258_v20 = vmax.f32 %v255_v19, 0.0 }
 0x209   :  { %529 = vmatmul.mubr.f32.vlgmr.msra.gmra.mrb[2].mxu0 %v258_v20 }
 0x2dc   :  { %v350_v22 = vpop.f32.mrb[2].mxu0 }
 0x2dd   :  { %v351_v23 = vadd.f32 %v374_v21, %v350_v22  ;;  %v530_v24 = vpop.f32.mrb[3].mxu0 }
 0x2df   :  { %v354_v25 = vmax.f32 %v351_v23, 0.0 }
 0x2e1   :  { %355 = vst [vmem:[#allocation9] sm:$0xff] %v354_v25 }
 0x2e2   :  { %689 = shalt.err (!%p686_p0)
}
 0x2e3   :  { %s690_s23 = scalar_lea.hbm %s868_s7, 128 }
 0x2e4   :  { %p691_p1 = scmp.ne.s32.totalorder %s868_s7, %s690_s23  ;;  %p694_p2 = scmp.lt.u32.totalorder %s690_s23, %s868_s7 }
 0x2e6   :  { %p696_p3 = pnand %p694_p2, %p691_p1 }
 0x2e8   :  { %699 = shalt.err (!%p696_p3)
}
 0x2e9   :  { %365 = dma.vmem_to_hbm [thread:$0]  %s363_s20, 128, %s868_s7, [#allocation5]  }
 0x2ea   :  { %704 = dma.done.wait [#allocation5], 128  }
 0x2eb   :  { %705 = vsyncadd [#allocation5], 4294967168 }
 0x2ec   :  { %369 = vsyncpa [#allocation4], 1 }
 0x2ed   :  { %370 = vsyncpa [#allocation7], 1 }
 0x2ee   :  { %371 = vsyncpa [#allocation5], 1 }

</bundles_post_ra>
